<compile_context>
chip_gen: v7x
topology: tpu7x:2x2x1
jax: 0.10.0
libtpu: 0.0.40
codegen_flags: <defaults>
</compile_context>

<pallas_src>
import functools

import jax
import jax.numpy as jnp
from jax.experimental import pallas as pl
from jax.experimental.pallas import tpu as pltpu

HIDDEN = 20
LANE = 128
SUBLANE = 8


def _round_up(x, m):
    return (x + m - 1) // m * m


def autoencoder_kernel(x_ref,
                       w1_ref, b1_ref,
                       w2_ref, b2_ref,
                       w3_ref, b3_ref,
                       w4_ref, b4_ref,
                       out_ref):
    """Fused encoder+decoder forward on one (TB, W) batch tile."""
    x = x_ref[...]                                                     # (TB, W)

    # --- encoder ---
    h1 = jnp.dot(x, w1_ref[...], preferred_element_type=jnp.float32) + b1_ref[...]
    h1 = jnp.maximum(h1, 0.0)                                          # ReLU
    z = jnp.dot(h1, w2_ref[...], preferred_element_type=jnp.float32) + b2_ref[...]

    # --- decoder ---
    h2 = jnp.dot(z, w3_ref[...], preferred_element_type=jnp.float32) + b3_ref[...]
    h2 = jnp.maximum(h2, 0.0)                                          # ReLU
    y = jnp.dot(h2, w4_ref[...], preferred_element_type=jnp.float32) + b4_ref[...]

    out_ref[...] = y.astype(out_ref.dtype)


def _vmem_budget_and_cap():
    """(streaming-tile budget, vmem_limit_bytes cap) gated on chip generation."""
    phys = 64 << 20  # conservative default: v7x-sized VMEM
    try:
        info = pltpu.get_tpu_info()
        phys = int(getattr(info, "vmem_capacity_bytes", phys))
    except Exception:
        pass
    if phys >= (100 << 20):          # v5e / v6e: 128 MiB physical VMEM per TC
        return (80 << 20), (100 << 20)
    return (26 << 20), (48 << 20)    # v7x: 64 MiB physical, keep scoped use <= ~48 MiB


def autoencoder_forward(x, params, *, max_batch_tile=8192):
    """x: (B, input_dim) float32. params: dict of weights/biases (see init_params)."""
    B, D = x.shape
    H = params["w1"].shape[1]
    L = params["w2"].shape[1]

    budget, vmem_cap = _vmem_budget_and_cap()

    # ---- lane packing (D < 128): pack G samples per 128-wide row -------------------
    G = LANE // D if (D < LANE and LANE % D == 0) else 1
    if G > 1 and B % G != 0:
        G = 1  # avoid a full HBM padding copy just to make B divisible by G

    if G > 1:
        rows, W = B // G, G * D
        x_in = x.reshape(rows, W)                      # contiguous reshape: free
        eye = jnp.eye(G, dtype=jnp.float32)
        w1 = jnp.kron(eye, params["w1"]); b1 = jnp.tile(params["b1"], (1, G))
        w2 = jnp.kron(eye, params["w2"]); b2 = jnp.tile(params["b2"], (1, G))
        w3 = jnp.kron(eye, params["w3"]); b3 = jnp.tile(params["b3"], (1, G))
        w4 = jnp.kron(eye, params["w4"]); b4 = jnp.tile(params["b4"], (1, G))
    else:
        rows, W = B, D
        x_in = x
        w1, b1 = params["w1"], params["b1"]
        w2, b2 = params["w2"], params["b2"]
        w3, b3 = params["w3"], params["b3"]
        w4, b4 = params["w4"], params["b4"]

    # ---- batch-tile sizing with lane-padded VMEM accounting -------------------------
    w_pad = _round_up(W, LANE)
    gh_pad = _round_up(G * H, LANE)
    gl_pad = _round_up(G * L, LANE)
    # per-row f32 bytes: double-buffered x + out streams, x/y working copies,
    # and the h1 / z / h2 intermediates (all lane-padded).
    per_row = 4 * (2 * 2 * w_pad + 2 * w_pad + gh_pad + gl_pad + gh_pad)

    tb = min(max_batch_tile, max(budget // per_row, SUBLANE))
    if tb >= rows:
        TB = rows                                  # single tile == full array dims
    else:
        TB = max(SUBLANE, (tb // SUBLANE) * SUBLANE)
    grid = (pl.cdiv(rows, TB),)                    # ragged last block is store-masked

    operands = (x_in, w1, b1, w2, b2, w3, b3, w4, b4)

    # Weights/biases: full-array blocks, constant index_map -> VMEM-resident across steps.
    weight_specs = [
        pl.BlockSpec(op.shape, lambda i, _nd=op.ndim: (0,) * _nd)   # no late-binding
        for op in operands[1:]
    ]
    in_specs = [pl.BlockSpec((TB, W), lambda i: (i, 0))] + weight_specs
    out_spec = pl.BlockSpec((TB, W), lambda i: (i, 0))

    def _padded_bytes(shape):
        r, c = shape
        return _round_up(r, SUBLANE) * _round_up(c, LANE) * 4

    weight_vmem = sum(_padded_bytes(op.shape) for op in operands[1:])
    vmem_needed = per_row * TB + 2 * weight_vmem + (4 << 20)
    vmem_limit = int(min(max(vmem_needed, 16 << 20), vmem_cap))

    flops = 2 * rows * (W * (G * H) + (G * H) * (G * L) + (G * L) * (G * H) + (G * H) * W)
    weight_hbm = sum(int(op.size) * op.dtype.itemsize for op in operands[1:])
    bytes_accessed = 2 * rows * W * 4 + weight_hbm

    out = pl.pallas_call(
        autoencoder_kernel,
        out_shape=jax.ShapeDtypeStruct((rows, W), jnp.float32),
        grid=grid,
        in_specs=in_specs,
        out_specs=out_spec,
        compiler_params=pltpu.CompilerParams(
            dimension_semantics=("parallel",),
            vmem_limit_bytes=vmem_limit,
        ),
        cost_estimate=pl.CostEstimate(
            flops=flops, bytes_accessed=bytes_accessed, transcendentals=0),
    )(*operands)

    return out.reshape(B, D)


def init_params(key, input_dim, latent_dim, hidden=HIDDEN):
    """Deterministic init mimicking PyTorch nn.Linear default
    (uniform(-1/sqrt(fan_in), 1/sqrt(fan_in))). Weights stored transposed:
    (in_features, out_features)."""
    def linear(key, fan_in, fan_out):
        kw, kb = jax.random.split(key)
        bound = 1.0 / jnp.sqrt(fan_in)
        w = jax.random.uniform(kw, (fan_in, fan_out), jnp.float32, -bound, bound)
        b = jax.random.uniform(kb, (1, fan_out), jnp.float32, -bound, bound)
        return w, b

    k1, k2, k3, k4 = jax.random.split(key, 4)
    w1, b1 = linear(k1, input_dim, hidden)      # encoder Linear(input_dim, 20)
    w2, b2 = linear(k2, hidden, latent_dim)     # encoder Linear(20, latent_dim)
    w3, b3 = linear(k3, latent_dim, hidden)     # decoder Linear(latent_dim, 20)
    w4, b4 = linear(k4, hidden, input_dim)      # decoder Linear(20, input_dim)
    return {"w1": w1, "b1": b1, "w2": w2, "b2": b2,
            "w3": w3, "b3": b3, "w4": w4, "b4": b4}


def reference_forward(x, p):
    h1 = jnp.maximum(x @ p["w1"] + p["b1"], 0.0)
    z = h1 @ p["w2"] + p["b2"]
    h2 = jnp.maximum(z @ p["w3"] + p["b3"], 0.0)
    return h2 @ p["w4"] + p["b4"]


if __name__ == "__main__":
    key = jax.random.PRNGKey(0)
    k_params, k_x = jax.random.split(key)

    input_dim, latent_dim = 32, 8
    params = init_params(k_params, input_dim, latent_dim)

    def run(x, **kw):
        f = jax.jit(functools.partial(autoencoder_forward, params=params, **kw))
        return jax.block_until_ready(f(x))

    # 1) tiny batch: unpacked path, single full-array tile.
    x_small = jax.random.normal(k_x, (2, input_dim), jnp.float32)
    out_small = run(x_small)
    ref_small = reference_forward(x_small, params)
    assert out_small.shape == x_small.shape
    assert jnp.allclose(out_small, ref_small, atol=1e-5, rtol=1e-5), "mismatch (small)"

    # 2) larger batch: lane-packed (G=4 -> 128-wide blocks), single grid step.
    x_big = jax.random.normal(k_x, (4096, input_dim), jnp.float32)
    out_big = run(x_big)
    assert out_big.shape == x_big.shape
    assert jnp.allclose(out_big, reference_forward(x_big, params),
                        atol=2e-4, rtol=2e-4), "mismatch (packed)"

    # 3) lane-packed, multi-step grid with a ragged, store-masked last block.
    x_rag = jax.random.normal(k_x, (2000, input_dim), jnp.float32)
    out_rag = run(x_rag, max_batch_tile=256)
    assert jnp.allclose(out_rag, reference_forward(x_rag, params),
                        atol=2e-4, rtol=2e-4), "mismatch (packed ragged)"

    # 4) unpacked (B % G != 0), multi-step ragged grid.
    x_odd = jax.random.normal(k_x, (1999, input_dim), jnp.float32)
    out_odd = run(x_odd, max_batch_tile=256)
    assert jnp.allclose(out_odd, reference_forward(x_odd, params),
                        atol=2e-4, rtol=2e-4), "mismatch (unpacked ragged)"

    print("KERNEL_OK")
</pallas_src>

<mosaic_0001>
module attributes {stable_mosaic.version = 11 : i64} {
  func.func @autoencoder_kernel(%arg0: i32, %arg1: memref<2x32xf32, #tpu.memory_space<vmem>>, %arg2: memref<32x20xf32, #tpu.memory_space<vmem>>, %arg3: memref<1x20xf32, #tpu.memory_space<vmem>>, %arg4: memref<20x8xf32, #tpu.memory_space<vmem>>, %arg5: memref<1x8xf32, #tpu.memory_space<vmem>>, %arg6: memref<8x20xf32, #tpu.memory_space<vmem>>, %arg7: memref<1x20xf32, #tpu.memory_space<vmem>>, %arg8: memref<20x32xf32, #tpu.memory_space<vmem>>, %arg9: memref<1x32xf32, #tpu.memory_space<vmem>>, %arg10: memref<2x32xf32, #tpu.memory_space<vmem>>) attributes {dimension_semantics = [#tpu.dimension_semantics<parallel>], iteration_bounds = array<i64: 1>, scalar_prefetch = 0 : i64, scratch_operands = 0 : i64, tpu.core_type = #tpu.core_type<tc>, window_params = [{transform_indices = @transform_0, window_bounds = array<i64: 2, 32>}, {pipeline_mode = #tpu.pipeline_mode<synchronous>, transform_indices = @transform_1, window_bounds = array<i64: 32, 20>}, {pipeline_mode = #tpu.pipeline_mode<synchronous>, transform_indices = @transform_2, window_bounds = array<i64: 1, 20>}, {pipeline_mode = #tpu.pipeline_mode<synchronous>, transform_indices = @transform_3, window_bounds = array<i64: 20, 8>}, {pipeline_mode = #tpu.pipeline_mode<synchronous>, transform_indices = @transform_4, window_bounds = array<i64: 1, 8>}, {pipeline_mode = #tpu.pipeline_mode<synchronous>, transform_indices = @transform_5, window_bounds = array<i64: 8, 20>}, {pipeline_mode = #tpu.pipeline_mode<synchronous>, transform_indices = @transform_6, window_bounds = array<i64: 1, 20>}, {pipeline_mode = #tpu.pipeline_mode<synchronous>, transform_indices = @transform_7, window_bounds = array<i64: 20, 32>}, {pipeline_mode = #tpu.pipeline_mode<synchronous>, transform_indices = @transform_8, window_bounds = array<i64: 1, 32>}, {transform_indices = @transform_9, window_bounds = array<i64: 2, 32>}]} {
    %c0 = arith.constant 0 : index
    %c0_0 = arith.constant 0 : index
    %0 = vector.load %arg1[%c0, %c0_0] : memref<2x32xf32, #tpu.memory_space<vmem>>, vector<2x32xf32>
    %c0_1 = arith.constant 0 : index
    %c0_2 = arith.constant 0 : index
    %1 = vector.load %arg2[%c0_1, %c0_2] : memref<32x20xf32, #tpu.memory_space<vmem>>, vector<32x20xf32>
    %cst = arith.constant dense<0.000000e+00> : vector<2x20xf32>
    %2 = tpu.matmul %0, %1, %cst {dimension_numbers = #tpu.dot_dimension_numbers<[1], [0], [0], [1], [0, 0, 1, 1], [], []>} : vector<2x32xf32>, vector<32x20xf32>, vector<2x20xf32> -> vector<2x20xf32>
    %c0_3 = arith.constant 0 : index
    %c0_4 = arith.constant 0 : index
    %3 = vector.load %arg3[%c0_3, %c0_4] : memref<1x20xf32, #tpu.memory_space<vmem>>, vector<1x20xf32>
    %4 = vector.broadcast %3 : vector<1x20xf32> to vector<2x20xf32>
    %5 = arith.addf %2, %4 : vector<2x20xf32>
    %cst_5 = arith.constant 0.000000e+00 : f32
    %6 = vector.broadcast %cst_5 : f32 to vector<2x20xf32>
    %7 = arith.maximumf %5, %6 : vector<2x20xf32>
    %c0_6 = arith.constant 0 : index
    %c0_7 = arith.constant 0 : index
    %8 = vector.load %arg4[%c0_6, %c0_7] : memref<20x8xf32, #tpu.memory_space<vmem>>, vector<20x8xf32>
    %cst_8 = arith.constant dense<0.000000e+00> : vector<2x8xf32>
    %9 = tpu.matmul %7, %8, %cst_8 {dimension_numbers = #tpu.dot_dimension_numbers<[1], [0], [0], [1], [0, 0, 1, 1], [], []>} : vector<2x20xf32>, vector<20x8xf32>, vector<2x8xf32> -> vector<2x8xf32>
    %c0_9 = arith.constant 0 : index
    %c0_10 = arith.constant 0 : index
    %10 = vector.load %arg5[%c0_9, %c0_10] : memref<1x8xf32, #tpu.memory_space<vmem>>, vector<1x8xf32>
    %11 = vector.broadcast %10 : vector<1x8xf32> to vector<2x8xf32>
    %12 = arith.addf %9, %11 : vector<2x8xf32>
    %c0_11 = arith.constant 0 : index
    %c0_12 = arith.constant 0 : index
    %13 = vector.load %arg6[%c0_11, %c0_12] : memref<8x20xf32, #tpu.memory_space<vmem>>, vector<8x20xf32>
    %cst_13 = arith.constant dense<0.000000e+00> : vector<2x20xf32>
    %14 = tpu.matmul %12, %13, %cst_13 {dimension_numbers = #tpu.dot_dimension_numbers<[1], [0], [0], [1], [0, 0, 1, 1], [], []>} : vector<2x8xf32>, vector<8x20xf32>, vector<2x20xf32> -> vector<2x20xf32>
    %c0_14 = arith.constant 0 : index
    %c0_15 = arith.constant 0 : index
    %15 = vector.load %arg7[%c0_14, %c0_15] : memref<1x20xf32, #tpu.memory_space<vmem>>, vector<1x20xf32>
    %16 = vector.broadcast %15 : vector<1x20xf32> to vector<2x20xf32>
    %17 = arith.addf %14, %16 : vector<2x20xf32>
    %cst_16 = arith.constant 0.000000e+00 : f32
    %18 = vector.broadcast %cst_16 : f32 to vector<2x20xf32>
    %19 = arith.maximumf %17, %18 : vector<2x20xf32>
    %c0_17 = arith.constant 0 : index
    %c0_18 = arith.constant 0 : index
    %20 = vector.load %arg8[%c0_17, %c0_18] : memref<20x32xf32, #tpu.memory_space<vmem>>, vector<20x32xf32>
    %cst_19 = arith.constant dense<0.000000e+00> : vector<2x32xf32>
    %21 = tpu.matmul %19, %20, %cst_19 {dimension_numbers = #tpu.dot_dimension_numbers<[1], [0], [0], [1], [0, 0, 1, 1], [], []>} : vector<2x20xf32>, vector<20x32xf32>, vector<2x32xf32> -> vector<2x32xf32>
    %c0_20 = arith.constant 0 : index
    %c0_21 = arith.constant 0 : index
    %22 = vector.load %arg9[%c0_20, %c0_21] : memref<1x32xf32, #tpu.memory_space<vmem>>, vector<1x32xf32>
    %23 = vector.broadcast %22 : vector<1x32xf32> to vector<2x32xf32>
    %24 = arith.addf %21, %23 : vector<2x32xf32>
    %c0_22 = arith.constant 0 : index
    %c0_23 = arith.constant 0 : index
    %25 = vector.load %arg10[%c0_22, %c0_23] : memref<2x32xf32, #tpu.memory_space<vmem>>, vector<2x32xf32>
    tpu.vector_store %arg10[%c0_22, %c0_23], %24 {strides = array<i32>} : memref<2x32xf32, #tpu.memory_space<vmem>>, vector<2x32xf32>,
    return
  }
  func.func @transform_0(%arg0: i32) -> (i32, i32) {
    %c0_i32 = arith.constant 0 : i32
    %c0_i32_0 = arith.constant 0 : i32
    return %arg0, %c0_i32 : i32, i32
  }
  func.func @transform_1(%arg0: i32) -> (i32, i32) {
    %c0_i32 = arith.constant 0 : i32
    %c0_i32_0 = arith.constant 0 : i32
    %c0_i32_1 = arith.constant 0 : i32
    return %c0_i32, %c0_i32_0 : i32, i32
  }
  func.func @transform_2(%arg0: i32) -> (i32, i32) {
    %c0_i32 = arith.constant 0 : i32
    %c0_i32_0 = arith.constant 0 : i32
    %c0_i32_1 = arith.constant 0 : i32
    return %c0_i32, %c0_i32_0 : i32, i32
  }
  func.func @transform_3(%arg0: i32) -> (i32, i32) {
    %c0_i32 = arith.constant 0 : i32
    %c0_i32_0 = arith.constant 0 : i32
    %c0_i32_1 = arith.constant 0 : i32
    return %c0_i32, %c0_i32_0 : i32, i32
  }
  func.func @transform_4(%arg0: i32) -> (i32, i32) {
    %c0_i32 = arith.constant 0 : i32
    %c0_i32_0 = arith.constant 0 : i32
    %c0_i32_1 = arith.constant 0 : i32
    return %c0_i32, %c0_i32_0 : i32, i32
  }
  func.func @transform_5(%arg0: i32) -> (i32, i32) {
    %c0_i32 = arith.constant 0 : i32
    %c0_i32_0 = arith.constant 0 : i32
    %c0_i32_1 = arith.constant 0 : i32
    return %c0_i32, %c0_i32_0 : i32, i32
  }
  func.func @transform_6(%arg0: i32) -> (i32, i32) {
    %c0_i32 = arith.constant 0 : i32
    %c0_i32_0 = arith.constant 0 : i32
    %c0_i32_1 = arith.constant 0 : i32
    return %c0_i32, %c0_i32_0 : i32, i32
  }
  func.func @transform_7(%arg0: i32) -> (i32, i32) {
    %c0_i32 = arith.constant 0 : i32
    %c0_i32_0 = arith.constant 0 : i32
    %c0_i32_1 = arith.constant 0 : i32
    return %c0_i32, %c0_i32_0 : i32, i32
  }
  func.func @transform_8(%arg0: i32) -> (i32, i32) {
    %c0_i32 = arith.constant 0 : i32
    %c0_i32_0 = arith.constant 0 : i32
    %c0_i32_1 = arith.constant 0 : i32
    return %c0_i32, %c0_i32_0 : i32, i32
  }
  func.func @transform_9(%arg0: i32) -> (i32, i32) {
    %c0_i32 = arith.constant 0 : i32
    %c0_i32_0 = arith.constant 0 : i32
    return %arg0, %c0_i32 : i32, i32
  }
}

</mosaic_0001>

<bundles_post_ra>
// kernel: autoencoder_forward.1
= control target key start
LH: loop header
LB: loop body
LE: loop exit
PB: predicated region body
PF: predicated region fallthrough
CT: control target
= control target key end

     0   :  { %14 = vsyncpa [#allocation3], 0  ;;  %s887_s0 = inlined_call_operand.hbm [shape: f32[2,32], index: 0, kind: input, shape index: {}]   ;;  %s888_s1 = inlined_call_operand.hbm [shape: f32[32,20], index: 1, kind: input, shape index: {}]   ;;  %s889_s2 = inlined_call_operand.hbm [shape: f32[1,20], index: 2, kind: input, shape index: {}]   ;;  %s890_s3 = inlined_call_operand.hbm [shape: f32[20,8], index: 3, kind: input, shape index: {}]   ;;  %s891_s4 = inlined_call_operand.hbm [shape: f32[1,8], index: 4, kind: input, shape index: {}]   ;;  %s892_s5 = inlined_call_operand.hbm [shape: f32[8,20], index: 5, kind: input, shape index: {}]   ;;  %s893_s6 = inlined_call_operand.vmem [shape: f32[1,20], index: 6, kind: input, shape index: {}]   ;;  %s894_s7 = inlined_call_operand.vmem [shape: f32[20,32], index: 7, kind: input, shape index: {}]   ;;  %s895_s8 = inlined_call_operand.vmem [shape: f32[1,32], index: 8, kind: input, shape index: {}]   ;;  %s896_s9 = inlined_call_operand.hbm [shape: f32[2,32], index: 9, kind: output, shape index: {}]  }
   0x1   :  { %15 = vsyncpa [#allocation6], 0 }
   0x2   :  { %16 = vsyncpa [#allocation9], 0 }
   0x3   :  { %17 = vsyncpa [#allocation12], 0 }
   0x4   :  { %18 = vsyncpa [#allocation4], 0  ;;  %s718_s30 = smov [#allocation5]   ;;  %s554_s13 = scalar_lea.hbm %s888_s1, 512 }
   0x5   :  { %s34_s10 = sshll.u32 %s718_s30, 4  ;;  %p555_p0 = scmp.ne.s32.totalorder %s888_s1, %s554_s13  ;;  %s35_s10 = int_to_ptr.vmem [resolvable:$true] %s34_s10 }
   0x6   :  { %p558_p1 = scmp.lt.u32.totalorder %s554_s13, %s888_s1 }
   0x8   :  { %p560_p2 = pnand %p558_p1, %p555_p0 }
   0xa   :  { %563 = shalt.err (!%p560_p2)
}
   0xb   :  { %s564_s18 = scalar_lea.vmem %s35_s10, 512  ;;  %p569_p4 = scmp.lt.s32.totalorder %s35_s10, %s35_s10 }
   0xc   :  { %p565_p3 = scmp.ne.s32.totalorder %s35_s10, %s564_s18  ;;  %p570_p5 = scmp.lt.s32.totalorder %s564_s18, %s564_s18 }
   0xe   :  { %p571_p6 = por %p570_p5, %p569_p4 }
  0x10   :  { %p572_p7 = pnand %p571_p6, %p565_p3 }
  0x12   :  { %575 = shalt.err (!%p572_p7)
}
  0x13   :  { %s719_s19 = smov 128   ;;  %s720_s20 = smov 8  }
  0x14   :  { %40 = dma.hbm_to_vmem [thread:$0]  %s888_s1, 512, %s35_s10, [#allocation6], %s719_s19, %s719_s19, %s720_s20  }
  0x15   :  { %s721_s23 = smov [#allocation8]   ;;  %s722_s25 = smov [#allocation2]  }
  0x16   :  { %s56_s24 = sshll.u32 %s721_s23, 4  ;;  %s25_s26 = sshll.u32 %s722_s25, 4  ;;  %s57_s24 = int_to_ptr.vmem [resolvable:$true] %s56_s24  ;;  %s26_s26 = int_to_ptr.vmem [resolvable:$true] %s25_s26 }
  0x17   :  { %s576_s29 = scalar_lea.hbm %s890_s3, 384 }
  0x18   :  { %p577_p8 = scmp.ne.s32.totalorder %s890_s3, %s576_s29  ;;  %p580_p9 = scmp.lt.u32.totalorder %s576_s29, %s890_s3 }
  0x1a   :  { %p582_p10 = pnand %p580_p9, %p577_p8 }
  0x1c   :  { %585 = shalt.err (!%p582_p10)
}
  0x1d   :  { %s586_s1 = scalar_lea.vmem %s57_s24, 384  ;;  %p591_p12 = scmp.lt.s32.totalorder %s57_s24, %s57_s24 }
  0x1e   :  { %p587_p11 = scmp.ne.s32.totalorder %s57_s24, %s586_s1  ;;  %p592_p13 = scmp.lt.s32.totalorder %s586_s1, %s586_s1 }
  0x20   :  { %p593_p0 = por %p592_p13, %p591_p12 }
  0x22   :  { %p594_p1 = pnand %p593_p0, %p587_p11 }
  0x24   :  { %597 = shalt.err (!%p594_p1)
}
  0x25   :  { %62 = dma.hbm_to_vmem [thread:$0]  %s890_s3, 384, %s57_s24, [#allocation9], %s719_s19, %s719_s19, %s720_s20  }
  0x26   :  { %s598_s17 = scalar_lea.hbm %s887_s0, 32 }
  0x27   :  { %p599_p2 = scmp.ne.s32.totalorder %s887_s0, %s598_s17  ;;  %p602_p3 = scmp.lt.u32.totalorder %s598_s17, %s887_s0 }
  0x29   :  { %p604_p4 = pnand %p602_p3, %p599_p2 }
  0x2b   :  { %607 = shalt.err (!%p604_p4)
}
  0x2c   :  { %s608_s25 = scalar_lea.vmem %s26_s26, 32  ;;  %p613_p6 = scmp.lt.s32.totalorder %s26_s26, %s26_s26 }
  0x2d   :  { %p609_p5 = scmp.ne.s32.totalorder %s26_s26, %s608_s25  ;;  %p614_p7 = scmp.lt.s32.totalorder %s608_s25, %s608_s25 }
  0x2f   :  { %p615_p8 = por %p614_p7, %p613_p6 }
  0x31   :  { %p616_p9 = pnand %p615_p8, %p609_p5 }
  0x33   :  { %619 = shalt.err (!%p616_p9)
}
  0x34   :  { %28 = dma.hbm_to_vmem [thread:$0]  %s887_s0, 32, %s26_s26, [#allocation3]  }
  0x35   :  { %s723_s20 = smov [#allocation7]   ;;  %s724_s27 = smov [#allocation10]  }
  0x36   :  { %s47_s24 = sshll.u32 %s723_s20, 4  ;;  %s69_s28 = sshll.u32 %s724_s27, 4  ;;  %s48_s24 = int_to_ptr.vmem [resolvable:$true] %s47_s24  ;;  %s70_s28 = int_to_ptr.vmem [resolvable:$true] %s69_s28 }
  0x37   :  { %s620_s11 = scalar_lea.hbm %s889_s2, 16 }
  0x38   :  { %p621_p10 = scmp.ne.s32.totalorder %s889_s2, %s620_s11  ;;  %p624_p11 = scmp.lt.u32.totalorder %s620_s11, %s889_s2 }
  0x3a   :  { %p626_p12 = pnand %p624_p11, %p621_p10 }
  0x3c   :  { %629 = shalt.err (!%p626_p12)
}
  0x3d   :  { %s630_s0 = scalar_lea.vmem %s48_s24, 16  ;;  %s634_s26 = scalar_lea.vmem %s48_s24, 32 }
  0x3e   :  { %p631_p13 = scmp.ne.s32.totalorder %s48_s24, %s630_s0  ;;  %p635_p0 = scmp.lt.s32.totalorder %s48_s24, %s48_s24 }
  0x3f   :  { %p636_p1 = scmp.lt.s32.totalorder %s634_s26, %s630_s0 }
  0x41   :  { %p637_p2 = por %p636_p1, %p635_p0 }
  0x43   :  { %p638_p3 = pnand %p637_p2, %p631_p13 }
  0x45   :  { %641 = shalt.err (!%p638_p3)
}
  0x46   :  { %50 = dma.hbm_to_vmem [thread:$0]  %s889_s2, 16, %s48_s24, [#allocation6]  }
  0x47   :  { %s642_s18 = scalar_lea.hbm %s891_s4, 16 }
  0x48   :  { %p643_p4 = scmp.ne.s32.totalorder %s891_s4, %s642_s18  ;;  %p646_p5 = scmp.lt.u32.totalorder %s642_s18, %s891_s4 }
  0x4a   :  { %p648_p6 = pnand %p646_p5, %p643_p4 }
  0x4c   :  { %651 = shalt.err (!%p648_p6)
}
  0x4d   :  { %s652_s3 = scalar_lea.vmem %s70_s28, 16  ;;  %s656_s19 = scalar_lea.vmem %s70_s28, 32 }
  0x4e   :  { %p653_p7 = scmp.ne.s32.totalorder %s70_s28, %s652_s3  ;;  %p657_p8 = scmp.lt.s32.totalorder %s70_s28, %s70_s28 }
  0x4f   :  { %p658_p9 = scmp.lt.s32.totalorder %s656_s19, %s652_s3 }
  0x51   :  { %p659_p10 = por %p658_p9, %p657_p8 }
  0x53   :  { %p660_p11 = pnand %p659_p10, %p653_p7 }
  0x55   :  { %663 = shalt.err (!%p660_p11)
}
  0x56   :  { %72 = dma.hbm_to_vmem [thread:$0]  %s891_s4, 16, %s70_s28, [#allocation9]  }
  0x57   :  { %s725_s24 = smov [#allocation11]   ;;  %s664_s11 = scalar_lea.hbm %s892_s5, 128 }
  0x58   :  { %s79_s27 = sshll.u32 %s725_s24, 4  ;;  %p665_p12 = scmp.ne.s32.totalorder %s892_s5, %s664_s11  ;;  %s80_s27 = int_to_ptr.vmem [resolvable:$true] %s79_s27 }
  0x59   :  { %p668_p13 = scmp.lt.u32.totalorder %s664_s11, %s892_s5 }
  0x5b   :  { %p670_p0 = pnand %p668_p13, %p665_p12 }
  0x5d   :  { %673 = shalt.err (!%p670_p0)
}
  0x5e   :  { %s674_s0 = scalar_lea.vmem %s80_s27, 128  ;;  %p679_p2 = scmp.lt.s32.totalorder %s80_s27, %s80_s27 }
  0x5f   :  { %p675_p1 = scmp.ne.s32.totalorder %s80_s27, %s674_s0  ;;  %p680_p3 = scmp.lt.s32.totalorder %s674_s0, %s674_s0 }
  0x61   :  { %p681_p4 = por %p680_p3, %p679_p2 }
  0x63   :  { %p682_p5 = pnand %p681_p4, %p675_p1 }
  0x65   :  { %685 = shalt.err (!%p682_p5)
}
  0x66   :  { %82 = dma.hbm_to_vmem [thread:$0]  %s892_s5, 128, %s80_s27, [#allocation12]  }
  0x67   :  { %708 = dma.done.wait [#allocation3], 32  }
  0x68   :  { %709 = vsyncadd [#allocation3], 4294967264 }
  0x69   :  { %710 = dma.done.wait [#allocation6], 528  }
  0x6a   :  { %711 = vsyncadd [#allocation6], 4294966768 }
  0x6b   :  { %712 = dma.done.wait [#allocation9], 400  }
  0x6c   :  { %713 = vsyncadd [#allocation9], 4294966896 }
  0x6d   :  { %714 = dma.done.wait [#allocation12], 128  }
  0x6e   :  { %715 = vsyncadd [#allocation12], 4294967168  ;;  %v726_v0 = vmov 0.0|0.0   ;;  %vm727_vm0 = vmmov 0   ;;  %v728_v1 = vmov 0.0   ;;  %v108_v2 = vld [vmem:[#allocation5] sm:$0xff] }
  0x6f   :  { %530 = vmatprep.subr.bf16.mxu0 %v726_v0  ;;  %504 = vmatprep.mubr.msk.f32.mxu0 %vm727_vm0, %v728_v1  ;;  %v109_v3 = vld [vmem:[#allocation5 + $0x8] sm:$0xff]  ;;  %v110_v4 = vld [vmem:[#allocation5 + $0x10] sm:$0xff]  ;;  %v111_v6 = vld [vmem:[#allocation5 + $0x18] sm:$0xff]  ;;  %vm119_vm1 = vcmask 261120   ;;  %vm208_vm2 = vcmask 1043456   ;;  %vm204_vm3 = vcmask 162816  }
  0x70   :  { %536 = vmatprep.subr.bf16.mxu1 %v726_v0  ;;  %513 = vmatprep.mubr.msk.f32.mxu1 %vm727_vm0, %v728_v1  ;;  %v531_v5 = vpack.c.bf16 %v109_v3, %v108_v2  ;;  %v534_v7 = vpack.c.bf16 %v111_v6, %v110_v4  ;;  %v107_v8 = vld [vmem:[#allocation2] sm:$0x3]  ;;  %v194_v9 = vld [vmem:[#allocation8] sm:$0xff]  ;;  %v195_v10 = vld [vmem:[#allocation8 + $0x8] sm:$0xff]  ;;  %vm290_vm4 = vcmask 64512   ;;  %s729_s25 = smov [#allocation13]  }
  0x71   :  { %v537_v11 = vpack.c.bf16 %v195_v10, %v194_v9  ;;  %v196_v12 = vld [vmem:[#allocation8 + $0x10] sm:$0xf]  ;;  %v471_v13 = vld [vmem:[#allocation7] ss:$0 sm:$0xff]  ;;  %v365_v19 = vld [vmem:[%s894_s7] sm:$0xff]  ;;  %s459_s3 = sshll.u32 %s729_s25, 4  ;;  %s460_s3 = int_to_ptr.vmem [resolvable:$true] %s459_s3 }
  0x72   :  { %532 = vmatpush3.bf16.msra.mxu0 %v531_v5  ;;  %v282_v18 = vld [vmem:[#allocation11] sm:$0xff]  ;;  %v366_v20 = vld [vmem:[%s894_s7 + $0x8] sm:$0xff]  ;;  %v473_v22 = vld [vmem:[#allocation10] ss:$0 sm:$0xff]  ;;  %vm451_vm5 = vcmask 254976   ;;  %p691_p7 = scmp.lt.s32.totalorder %s460_s3, %s460_s3 }
  0x73   :  { %533 = vmatprep.subr.bf16.mxu0 %v726_v0  ;;  %538 = vmatpush3.bf16.msra.mxu1 %v537_v11  ;;  %v540_v21 = vpack.c.bf16 %v366_v20, %v365_v19  ;;  %v367_v26 = vld [vmem:[%s894_s7 + $0x10] sm:$0xf]  ;;  %v476_v27 = vld [vmem:[%s893_s6] ss:$0 sm:$0xff]  ;;  %s686_s7 = scalar_lea.vmem %s460_s3, 32 }
  0x74   :  { %511 = vmatprep.subr.mxu1 %v728_v1  ;;  %v478_v32 = vld [vmem:[%s895_s8] ss:$0 sm:$0xff]  ;;  %p687_p6 = scmp.ne.s32.totalorder %s460_s3, %s686_s7  ;;  %p692_p8 = scmp.lt.s32.totalorder %s686_s7, %s686_s7 }
  0x76   :  { %535 = vmatpush3.bf16.msra.mxu0 %v534_v7  ;;  %p693_p9 = por %p692_p8, %p691_p7 }
  0x77   :  { %539 = vmatprep.subr.bf16.mxu0 %v726_v0  ;;  %512 = vmatpush3.msk.msra.mxu1 %vm208_vm2, %v196_v12 }
  0x78   :  { %516 = vmatprep.subr.mxu1 %v728_v1  ;;  %p694_p10 = pnand %p693_p9, %p687_p6 }
  0x79   :  { %505 = vmatmul.mubr.msk.f32.vlgmr.msra.gmra.mrb[0].mxu0 %vm119_vm1, %v107_v8 }
  0x7a   :  { %527 = vmatprep.mubr.msk.f32.mxu0 %vm727_vm0, %v728_v1  ;;  %541 = vmatpush3.bf16.msra.mxu0 %v540_v21 }
  0x7b   :  { %525 = vmatprep.subr.mxu0 %v728_v1 }
  0x7e   :  { %526 = vmatpush3.msk.msra.mxu0 %vm208_vm2, %v367_v26 }
 0x14c   :  { %v189_v14 = vpop.f32.mrb[0].mxu0 }
 0x14d   :  { %v190_v15 = vadd.f32 %v471_v13, %v189_v14  ;;  %v506_v16 = vpop.f32.mrb[1].mxu0 }
 0x14f   :  { %v193_v17 = vmax.f32 %v190_v15, 0.0 }
 0x151   :  { %514 = vmatmul.mubr.msk.f32.vlgmr.msra.gmra.mrb[0].mxu1 %vm204_vm3, %v193_v17 }
 0x152   :  { %517 = vmatpush3.msra.mxu1 %v282_v18  ;;  %518 = vmatprep.mubr.msk.f32.mxu1 %vm727_vm0, %v728_v1 }
 0x224   :  { %v278_v23 = vpop.f32.mrb[0].mxu1 }
 0x225   :  { %v279_v24 = vadd.f32 %v473_v22, %v278_v23  ;;  %v515_v25 = vpop.f32.mrb[1].mxu1 }
 0x227   :  { %519 = vmatmul.mubr.msk.f32.vlgmr.msra.gmra.mrb[2].mxu1 %vm290_vm4, %v279_v24 }
 0x2fa   :  { %v360_v28 = vpop.f32.mrb[2].mxu1 }
 0x2fb   :  { %v361_v29 = vadd.f32 %v476_v27, %v360_v28  ;;  %v520_v30 = vpop.f32.mrb[3].mxu1 }
 0x2fd   :  { %v364_v31 = vmax.f32 %v361_v29, 0.0 }
 0x2ff   :  { %528 = vmatmul.mubr.msk.f32.vlgmr.msra.gmra.mrb[2].mxu0 %vm204_vm3, %v364_v31 }
 0x3d2   :  { %v447_v33 = vpop.f32.mrb[2].mxu0 }
 0x3d3   :  { %v448_v34 = vadd.f32 %v478_v32, %v447_v33  ;;  %v529_v35 = vpop.f32.mrb[3].mxu0 }
 0x3d5   :  { %452 = vst.msk [vmem:[#allocation13] sm:$0x3] %vm451_vm5, %v448_v34 }
 0x3d6   :  { %697 = shalt.err (!%p694_p10)
}
 0x3d7   :  { %s698_s2 = scalar_lea.hbm %s896_s9, 32 }
 0x3d8   :  { %p699_p11 = scmp.ne.s32.totalorder %s896_s9, %s698_s2  ;;  %p702_p12 = scmp.lt.u32.totalorder %s698_s2, %s896_s9 }
 0x3da   :  { %p704_p13 = pnand %p702_p12, %p699_p11 }
 0x3dc   :  { %707 = shalt.err (!%p704_p13)
}
 0x3dd   :  { %462 = dma.vmem_to_hbm [thread:$0]  %s460_s3, 32, %s896_s9, [#allocation4]  }
 0x3de   :  { %716 = dma.done.wait [#allocation4], 32  }
 0x3df   :  { %717 = vsyncadd [#allocation4], 4294967264 }
 0x3e0   :  { %466 = vsyncpa [#allocation3], 1 }
 0x3e1   :  { %467 = vsyncpa [#allocation6], 1 }
 0x3e2   :  { %468 = vsyncpa [#allocation9], 1 }
 0x3e3   :  { %469 = vsyncpa [#allocation12], 1 }
 0x3e4   :  { %470 = vsyncpa [#allocation4], 1 }

</bundles_post_ra>
